<compile_context>
chip_gen: v6e
topology: v6e:2x2x1
jax: 0.10.0
libtpu: 0.0.40
codegen_flags: <defaults>
</compile_context>

<pallas_src>
import jax
import jax.numpy as jnp
from jax.experimental import pallas as pl
from jax.experimental.pallas import tpu as pltpu

INPUT_SIZE = 220
HIDDEN_DIM = 64
OUTPUT_SIZE = 90

IN_PAD = 256    # 220 padded up to a multiple of 128 lanes
OUT_PAD = 128   # 90 padded up to a full 128-lane vreg


def _round_up(n, m):
    return ((n + m - 1) // m) * m


def fc_kernel(x_ref,
              w1_ref, b1_ref,
              w2_ref, b2_ref,
              w3_ref, b3_ref,
              w4_ref, b4_ref,
              o_ref):
    # Layer 1: Linear(256(=220 padded) -> 64) + ReLU
    h = jnp.dot(x_ref[...], w1_ref[...], preferred_element_type=jnp.float32)
    h = jnp.maximum(h + b1_ref[...], 0.0)
    # Layer 2: Linear(64 -> 64) + ReLU
    h = jnp.dot(h, w2_ref[...], preferred_element_type=jnp.float32)
    h = jnp.maximum(h + b2_ref[...], 0.0)
    # Layer 3: Linear(64 -> 64) + ReLU
    h = jnp.dot(h, w3_ref[...], preferred_element_type=jnp.float32)
    h = jnp.maximum(h + b3_ref[...], 0.0)
    # Layer 4: Linear(64 -> 128(=90 padded)), no activation, lane-dense store
    h = jnp.dot(h, w4_ref[...], preferred_element_type=jnp.float32)
    o_ref[...] = (h + b4_ref[...]).astype(o_ref.dtype)


def fc_forward(x, params, tile_b=2048):
    """x: (B, ...) with 220 features after flatten.  Returns (B, 10, 9) f32."""
    (w1, b1), (w2, b2), (w3, b3), (w4, b4) = params
    B = x.shape[0]
    x = x.reshape(B, -1)  # torch .flatten(start_dim=1)

    # --- host-side (XLA-fused) padding glue -------------------------------
    # Feature dim 220 -> 256: pad x columns and w1 rows with zeros.
    x_p = jnp.pad(x, ((0, 0), (0, IN_PAD - INPUT_SIZE)))
    w1_p = jnp.pad(w1, ((0, IN_PAD - INPUT_SIZE), (0, 0)))
    # Output dim 90 -> 128: pad w4 columns and b4 with zeros.
    w4_p = jnp.pad(w4, ((0, 0), (0, OUT_PAD - OUTPUT_SIZE)))
    b4_p = jnp.pad(b4, ((0, 0), (0, OUT_PAD - OUTPUT_SIZE)))

    # Batch tiling: tile must be a multiple of 8; shrink for tiny batches.
    tile_b = max(8, min(tile_b, _round_up(B, 8)))
    b_pad = _round_up(B, tile_b)
    if b_pad != B:
        x_p = jnp.pad(x_p, ((0, b_pad - B), (0, 0)))
    grid = (b_pad // tile_b,)

    # Streamed tensors get a per-step block; weights/biases stay resident
    # (constant index_map) and are only DMA'd once.
    x_spec = pl.BlockSpec((tile_b, IN_PAD), lambda i: (i, 0))
    out_spec = pl.BlockSpec((tile_b, OUT_PAD), lambda i: (i, 0))

    def _resident(shape):
        return pl.BlockSpec(shape, lambda i: (0, 0))

    in_specs = [
        x_spec,
        _resident((IN_PAD, HIDDEN_DIM)), _resident((1, HIDDEN_DIM)),
        _resident((HIDDEN_DIM, HIDDEN_DIM)), _resident((1, HIDDEN_DIM)),
        _resident((HIDDEN_DIM, HIDDEN_DIM)), _resident((1, HIDDEN_DIM)),
        _resident((HIDDEN_DIM, OUT_PAD)), _resident((1, OUT_PAD)),
    ]

    # Advisory cost hint for XLA scheduling (kernel is HBM-bound).
    flops = 2 * b_pad * (IN_PAD * HIDDEN_DIM
                         + 2 * HIDDEN_DIM * HIDDEN_DIM
                         + HIDDEN_DIM * OUT_PAD)
    bytes_accessed = 4 * (b_pad * (IN_PAD + OUT_PAD)
                          + IN_PAD * HIDDEN_DIM + 2 * HIDDEN_DIM * HIDDEN_DIM
                          + HIDDEN_DIM * OUT_PAD + 3 * HIDDEN_DIM + OUT_PAD)

    out = pl.pallas_call(
        fc_kernel,
        out_shape=jax.ShapeDtypeStruct((b_pad, OUT_PAD), jnp.float32),
        grid=grid,
        in_specs=in_specs,
        out_specs=out_spec,
        compiler_params=pltpu.CompilerParams(
            dimension_semantics=("parallel",)),
        cost_estimate=pl.CostEstimate(
            flops=flops, transcendentals=0, bytes_accessed=bytes_accessed),
    )(x_p, w1_p, b1, w2, b2, w3, b3, w4_p, b4_p)

    # Strip batch + lane padding, then reshape exactly like the torch module.
    return out[:B, :OUTPUT_SIZE].reshape(-1, 10, 9)


def init_params(key):
    """Deterministic init.  Weights stored (in, out); biases stored (1, out).

    Stored W is the transpose of PyTorch's (out, in) weight, so y = x @ W + b
    matches nn.Linear exactly.
    """
    dims = [(INPUT_SIZE, HIDDEN_DIM),
            (HIDDEN_DIM, HIDDEN_DIM),
            (HIDDEN_DIM, HIDDEN_DIM),
            (HIDDEN_DIM, OUTPUT_SIZE)]
    params = []
    for (fan_in, fan_out) in dims:
        key, kw, kb = jax.random.split(key, 3)
        bound = 1.0 / jnp.sqrt(float(fan_in))  # PyTorch Linear default range
        w = jax.random.uniform(kw, (fan_in, fan_out), jnp.float32, -bound, bound)
        b = jax.random.uniform(kb, (1, fan_out), jnp.float32, -bound, bound)
        params.append((w, b))
    return params


def fc_reference(x, params):
    """Pure-JAX reference of the PyTorch forward."""
    h = x.reshape(x.shape[0], -1)
    (w1, b1), (w2, b2), (w3, b3), (w4, b4) = params
    h = jnp.maximum(h @ w1 + b1, 0.0)
    h = jnp.maximum(h @ w2 + b2, 0.0)
    h = jnp.maximum(h @ w3 + b3, 0.0)
    h = h @ w4 + b4
    return h.reshape(-1, 10, 9)


if __name__ == "__main__":
    key = jax.random.PRNGKey(0)
    key, kx = jax.random.split(key)

    B = 2
    # Module flattens from dim 1 down to 220 features; feed it already-flat input.
    x = jax.random.normal(kx, (B, INPUT_SIZE), jnp.float32)

    params = init_params(key)

    out = fc_forward(x, params)
    out = jax.block_until_ready(out)

    ref = fc_reference(x, params)
    assert out.shape == (B, 10, 9), out.shape
    assert jnp.allclose(out, ref, atol=1e-5, rtol=1e-5), "mismatch vs reference"

    # Also exercise a ragged / larger batch to validate the tiling + padding path.
    key, kx2 = jax.random.split(key)
    B2 = 300  # not a multiple of the tile size
    x2 = jax.random.normal(kx2, (B2, INPUT_SIZE), jnp.float32)
    out2 = jax.block_until_ready(fc_forward(x2, params))
    ref2 = fc_reference(x2, params)
    assert out2.shape == (B2, 10, 9), out2.shape
    assert jnp.allclose(out2, ref2, atol=1e-5, rtol=1e-5), "mismatch (large batch)"

    print("KERNEL_OK")
</pallas_src>

<mosaic_0001>
module attributes {stable_mosaic.version = 11 : i64} {
  func.func @fc_kernel(%arg0: i32, %arg1: memref<8x256xf32, #tpu.memory_space<vmem>>, %arg2: memref<256x64xf32, #tpu.memory_space<vmem>>, %arg3: memref<1x64xf32, #tpu.memory_space<vmem>>, %arg4: memref<64x64xf32, #tpu.memory_space<vmem>>, %arg5: memref<1x64xf32, #tpu.memory_space<vmem>>, %arg6: memref<64x64xf32, #tpu.memory_space<vmem>>, %arg7: memref<1x64xf32, #tpu.memory_space<vmem>>, %arg8: memref<64x128xf32, #tpu.memory_space<vmem>>, %arg9: memref<1x128xf32, #tpu.memory_space<vmem>>, %arg10: memref<8x128xf32, #tpu.memory_space<vmem>>) attributes {dimension_semantics = [#tpu.dimension_semantics<parallel>], iteration_bounds = array<i64: 1>, scalar_prefetch = 0 : i64, scratch_operands = 0 : i64, tpu.core_type = #tpu.core_type<tc>, window_params = [{transform_indices = @transform_0, window_bounds = array<i64: 8, 256>}, {pipeline_mode = #tpu.pipeline_mode<synchronous>, transform_indices = @transform_1, window_bounds = array<i64: 256, 64>}, {pipeline_mode = #tpu.pipeline_mode<synchronous>, transform_indices = @transform_2, window_bounds = array<i64: 1, 64>}, {pipeline_mode = #tpu.pipeline_mode<synchronous>, transform_indices = @transform_3, window_bounds = array<i64: 64, 64>}, {pipeline_mode = #tpu.pipeline_mode<synchronous>, transform_indices = @transform_4, window_bounds = array<i64: 1, 64>}, {pipeline_mode = #tpu.pipeline_mode<synchronous>, transform_indices = @transform_5, window_bounds = array<i64: 64, 64>}, {pipeline_mode = #tpu.pipeline_mode<synchronous>, transform_indices = @transform_6, window_bounds = array<i64: 1, 64>}, {pipeline_mode = #tpu.pipeline_mode<synchronous>, transform_indices = @transform_7, window_bounds = array<i64: 64, 128>}, {pipeline_mode = #tpu.pipeline_mode<synchronous>, transform_indices = @transform_8, window_bounds = array<i64: 1, 128>}, {transform_indices = @transform_9, window_bounds = array<i64: 8, 128>}]} {
    %c0 = arith.constant 0 : index
    %c0_0 = arith.constant 0 : index
    %0 = vector.load %arg1[%c0, %c0_0] : memref<8x256xf32, #tpu.memory_space<vmem>>, vector<8x256xf32>
    %c0_1 = arith.constant 0 : index
    %c0_2 = arith.constant 0 : index
    %1 = vector.load %arg2[%c0_1, %c0_2] : memref<256x64xf32, #tpu.memory_space<vmem>>, vector<256x64xf32>
    %cst = arith.constant dense<0.000000e+00> : vector<8x64xf32>
    %2 = tpu.matmul %0, %1, %cst {dimension_numbers = #tpu.dot_dimension_numbers<[1], [0], [0], [1], [0, 0, 1, 1], [], []>} : vector<8x256xf32>, vector<256x64xf32>, vector<8x64xf32> -> vector<8x64xf32>
    %c0_3 = arith.constant 0 : index
    %c0_4 = arith.constant 0 : index
    %3 = vector.load %arg3[%c0_3, %c0_4] : memref<1x64xf32, #tpu.memory_space<vmem>>, vector<1x64xf32>
    %4 = vector.broadcast %3 : vector<1x64xf32> to vector<8x64xf32>
    %5 = arith.addf %2, %4 : vector<8x64xf32>
    %cst_5 = arith.constant 0.000000e+00 : f32
    %6 = vector.broadcast %cst_5 : f32 to vector<8x64xf32>
    %7 = arith.maximumf %5, %6 : vector<8x64xf32>
    %c0_6 = arith.constant 0 : index
    %c0_7 = arith.constant 0 : index
    %8 = vector.load %arg4[%c0_6, %c0_7] : memref<64x64xf32, #tpu.memory_space<vmem>>, vector<64x64xf32>
    %cst_8 = arith.constant dense<0.000000e+00> : vector<8x64xf32>
    %9 = tpu.matmul %7, %8, %cst_8 {dimension_numbers = #tpu.dot_dimension_numbers<[1], [0], [0], [1], [0, 0, 1, 1], [], []>} : vector<8x64xf32>, vector<64x64xf32>, vector<8x64xf32> -> vector<8x64xf32>
    %c0_9 = arith.constant 0 : index
    %c0_10 = arith.constant 0 : index
    %10 = vector.load %arg5[%c0_9, %c0_10] : memref<1x64xf32, #tpu.memory_space<vmem>>, vector<1x64xf32>
    %11 = vector.broadcast %10 : vector<1x64xf32> to vector<8x64xf32>
    %12 = arith.addf %9, %11 : vector<8x64xf32>
    %cst_11 = arith.constant 0.000000e+00 : f32
    %13 = vector.broadcast %cst_11 : f32 to vector<8x64xf32>
    %14 = arith.maximumf %12, %13 : vector<8x64xf32>
    %c0_12 = arith.constant 0 : index
    %c0_13 = arith.constant 0 : index
    %15 = vector.load %arg6[%c0_12, %c0_13] : memref<64x64xf32, #tpu.memory_space<vmem>>, vector<64x64xf32>
    %cst_14 = arith.constant dense<0.000000e+00> : vector<8x64xf32>
    %16 = tpu.matmul %14, %15, %cst_14 {dimension_numbers = #tpu.dot_dimension_numbers<[1], [0], [0], [1], [0, 0, 1, 1], [], []>} : vector<8x64xf32>, vector<64x64xf32>, vector<8x64xf32> -> vector<8x64xf32>
    %c0_15 = arith.constant 0 : index
    %c0_16 = arith.constant 0 : index
    %17 = vector.load %arg7[%c0_15, %c0_16] : memref<1x64xf32, #tpu.memory_space<vmem>>, vector<1x64xf32>
    %18 = vector.broadcast %17 : vector<1x64xf32> to vector<8x64xf32>
    %19 = arith.addf %16, %18 : vector<8x64xf32>
    %cst_17 = arith.constant 0.000000e+00 : f32
    %20 = vector.broadcast %cst_17 : f32 to vector<8x64xf32>
    %21 = arith.maximumf %19, %20 : vector<8x64xf32>
    %c0_18 = arith.constant 0 : index
    %c0_19 = arith.constant 0 : index
    %22 = vector.load %arg8[%c0_18, %c0_19] : memref<64x128xf32, #tpu.memory_space<vmem>>, vector<64x128xf32>
    %cst_20 = arith.constant dense<0.000000e+00> : vector<8x128xf32>
    %23 = tpu.matmul %21, %22, %cst_20 {dimension_numbers = #tpu.dot_dimension_numbers<[1], [0], [0], [1], [0, 0, 1, 1], [], []>} : vector<8x64xf32>, vector<64x128xf32>, vector<8x128xf32> -> vector<8x128xf32>
    %c0_21 = arith.constant 0 : index
    %c0_22 = arith.constant 0 : index
    %24 = vector.load %arg9[%c0_21, %c0_22] : memref<1x128xf32, #tpu.memory_space<vmem>>, vector<1x128xf32>
    %25 = vector.broadcast %24 : vector<1x128xf32> to vector<8x128xf32>
    %26 = arith.addf %23, %25 : vector<8x128xf32>
    %c0_23 = arith.constant 0 : index
    %c0_24 = arith.constant 0 : index
    %27 = vector.load %arg10[%c0_23, %c0_24] : memref<8x128xf32, #tpu.memory_space<vmem>>, vector<8x128xf32>
    tpu.vector_store %arg10[%c0_23, %c0_24], %26 {strides = array<i32>} : memref<8x128xf32, #tpu.memory_space<vmem>>, vector<8x128xf32>,
    return
  }
  func.func @transform_0(%arg0: i32) -> (i32, i32) {
    %c0_i32 = arith.constant 0 : i32
    %c0_i32_0 = arith.constant 0 : i32
    return %arg0, %c0_i32 : i32, i32
  }
  func.func @transform_1(%arg0: i32) -> (i32, i32) {
    %c0_i32 = arith.constant 0 : i32
    %c0_i32_0 = arith.constant 0 : i32
    %c0_i32_1 = arith.constant 0 : i32
    return %c0_i32, %c0_i32_0 : i32, i32
  }
  func.func @transform_2(%arg0: i32) -> (i32, i32) {
    %c0_i32 = arith.constant 0 : i32
    %c0_i32_0 = arith.constant 0 : i32
    %c0_i32_1 = arith.constant 0 : i32
    return %c0_i32, %c0_i32_0 : i32, i32
  }
  func.func @transform_3(%arg0: i32) -> (i32, i32) {
    %c0_i32 = arith.constant 0 : i32
    %c0_i32_0 = arith.constant 0 : i32
    %c0_i32_1 = arith.constant 0 : i32
    return %c0_i32, %c0_i32_0 : i32, i32
  }
  func.func @transform_4(%arg0: i32) -> (i32, i32) {
    %c0_i32 = arith.constant 0 : i32
    %c0_i32_0 = arith.constant 0 : i32
    %c0_i32_1 = arith.constant 0 : i32
    return %c0_i32, %c0_i32_0 : i32, i32
  }
  func.func @transform_5(%arg0: i32) -> (i32, i32) {
    %c0_i32 = arith.constant 0 : i32
    %c0_i32_0 = arith.constant 0 : i32
    %c0_i32_1 = arith.constant 0 : i32
    return %c0_i32, %c0_i32_0 : i32, i32
  }
  func.func @transform_6(%arg0: i32) -> (i32, i32) {
    %c0_i32 = arith.constant 0 : i32
    %c0_i32_0 = arith.constant 0 : i32
    %c0_i32_1 = arith.constant 0 : i32
    return %c0_i32, %c0_i32_0 : i32, i32
  }
  func.func @transform_7(%arg0: i32) -> (i32, i32) {
    %c0_i32 = arith.constant 0 : i32
    %c0_i32_0 = arith.constant 0 : i32
    %c0_i32_1 = arith.constant 0 : i32
    return %c0_i32, %c0_i32_0 : i32, i32
  }
  func.func @transform_8(%arg0: i32) -> (i32, i32) {
    %c0_i32 = arith.constant 0 : i32
    %c0_i32_0 = arith.constant 0 : i32
    %c0_i32_1 = arith.constant 0 : i32
    return %c0_i32, %c0_i32_0 : i32, i32
  }
  func.func @transform_9(%arg0: i32) -> (i32, i32) {
    %c0_i32 = arith.constant 0 : i32
    %c0_i32_0 = arith.constant 0 : i32
    return %arg0, %c0_i32 : i32, i32
  }
}

</mosaic_0001>

<bundles_post_ra>
// kernel: tpu_custom_call.1
= control target key start
LH: loop header
LB: loop body
LE: loop exit
PB: predicated region body
PF: predicated region fallthrough
CT: control target
= control target key end

     0   :  { %v578_v4 = vmov 0.0   ;;  %s850_s0 = inlined_call_operand.vmem [shape: f32[8,256], index: 0, kind: input, shape index: {}]   ;;  %s851_s1 = inlined_call_operand.vmem [shape: f32[256,64], index: 1, kind: input, shape index: {}]   ;;  %s852_s2 = inlined_call_operand.vmem [shape: f32[1,64], index: 2, kind: input, shape index: {}]   ;;  %s853_s3 = inlined_call_operand.vmem [shape: f32[64,64], index: 3, kind: input, shape index: {}]   ;;  %s854_s4 = inlined_call_operand.vmem [shape: f32[1,64], index: 4, kind: input, shape index: {}]   ;;  %s855_s5 = inlined_call_operand.vmem [shape: f32[64,64], index: 5, kind: input, shape index: {}]   ;;  %s856_s6 = inlined_call_operand.vmem [shape: f32[1,64], index: 6, kind: input, shape index: {}]   ;;  %s857_s7 = inlined_call_operand.vmem [shape: f32[64,128], index: 7, kind: input, shape index: {}]   ;;  %s858_s8 = inlined_call_operand.vmem [shape: f32[1,128], index: 8, kind: input, shape index: {}]   ;;  %s859_s9 = inlined_call_operand.hbm [shape: f32[8,128], index: 9, kind: output, shape index: {}]  }
   0x1   :  { %v66_v0 = vld [vmem:[%s851_s1 + $0xf8] sm:$0xff]  ;;  %v65_v2 = vld [vmem:[%s851_s1 + $0xf0] sm:$0xff]  ;;  %496 = vmatprep.subr.mxu1 %v578_v4  ;;  %v64_v5 = vld [vmem:[%s851_s1 + $0xe8] sm:$0xff] }
   0x2   :  { %v50_v1 = vld [vmem:[%s851_s1 + $0x78] sm:$0xff]  ;;  %434 = vmatprep.subr.mxu0 %v66_v0  ;;  %v49_v3 = vld [vmem:[%s851_s1 + $0x70] sm:$0xff]  ;;  %v48_v6 = vld [vmem:[%s851_s1 + $0x68] sm:$0xff] }
   0x3   :  { %435 = vmatpush3.msra.mxu0 %v50_v1  ;;  %v63_v7 = vld [vmem:[%s851_s1 + $0xe0] sm:$0xff]  ;;  %v62_v9 = vld [vmem:[%s851_s1 + $0xd8] sm:$0xff]  ;;  %v61_v11 = vld [vmem:[%s851_s1 + $0xd0] sm:$0xff] }
   0x4   :  { %436 = vmatprep.subr.mxu0 %v65_v2  ;;  %v47_v8 = vld [vmem:[%s851_s1 + $0x60] sm:$0xff]  ;;  %v46_v10 = vld [vmem:[%s851_s1 + $0x58] sm:$0xff]  ;;  %v45_v12 = vld [vmem:[%s851_s1 + $0x50] sm:$0xff] }
   0x5   :  { %437 = vmatpush3.msra.mxu0 %v49_v3  ;;  %v60_v13 = vld [vmem:[%s851_s1 + $0xc8] sm:$0xff]  ;;  %v152_v16 = vld [vmem:[%s853_s3 + $0x38] sm:$0xff]  ;;  %v151_v17 = vld [vmem:[%s853_s3 + $0x30] sm:$0xff] }
   0x6   :  { %438 = vmatprep.subr.mxu0 %v64_v5  ;;  %v34_v14 = vld [vmem:[%s850_s0 + $0x8] sm:$0xff]  ;;  %v59_v18 = vld [vmem:[%s851_s1 + $0xc0] sm:$0xff]  ;;  %497 = vmatpush3.msra.mxu1 %v152_v16 }
   0x7   :  { %439 = vmatpush3.msra.mxu0 %v48_v6  ;;  %v44_v15 = vld [vmem:[%s851_s1 + $0x48] sm:$0xff]  ;;  %138 = vmatprep.mubr.f32.mxu0 %v34_v14 }
   0x8   :  { %440 = vmatprep.subr.mxu0 %v63_v7 }
   0x9   :  { %441 = vmatpush3.msra.mxu0 %v47_v8 }
   0xa   :  { %442 = vmatprep.subr.mxu0 %v62_v9 }
   0xb   :  { %443 = vmatpush3.msra.mxu0 %v46_v10 }
   0xc   :  { %444 = vmatprep.subr.mxu0 %v61_v11 }
   0xd   :  { %445 = vmatpush3.msra.mxu0 %v45_v12 }
   0xe   :  { %14 = vsyncpa [#allocation3], 0  ;;  %446 = vmatprep.subr.mxu0 %v60_v13  ;;  %v43_v19 = vld [vmem:[%s851_s1 + $0x40] sm:$0xff]  ;;  %498 = vmatprep.subr.mxu1 %v578_v4  ;;  %v150_v20 = vld [vmem:[%s853_s3 + $0x28] sm:$0xff]  ;;  %vm579_vm0 = vmmov 0   ;;  %vm160_vm1 = vcmask 523264  }
   0xf   :  { %447 = vmatpush3.msra.mxu0 %v44_v15  ;;  %v58_v21 = vld [vmem:[%s851_s1 + $0xb8] sm:$0xff]  ;;  %499 = vmatpush3.msra.mxu1 %v151_v17  ;;  %v57_v23 = vld [vmem:[%s851_s1 + $0xb0] sm:$0xff]  ;;  %v56_v25 = vld [vmem:[%s851_s1 + $0xa8] sm:$0xff]  ;;  %s580_s18 = smov [#allocation2]  }
  0x10   :  { %448 = vmatprep.subr.mxu0 %v59_v18  ;;  %v42_v22 = vld [vmem:[%s851_s1 + $0x38] sm:$0xff]  ;;  %500 = vmatprep.subr.mxu1 %v578_v4  ;;  %v41_v24 = vld [vmem:[%s851_s1 + $0x30] sm:$0xff]  ;;  %v40_v26 = vld [vmem:[%s851_s1 + $0x28] sm:$0xff]  ;;  %s419_s19 = sshll.u32 %s580_s18, 4  ;;  %s420_s19 = int_to_ptr.vmem [resolvable:$true] %s419_s19 }
  0x11   :  { %449 = vmatpush3.msra.mxu0 %v43_v19  ;;  %501 = vmatpush3.msra.mxu1 %v150_v20  ;;  %v55_v27 = vld [vmem:[%s851_s1 + $0xa0] sm:$0xff]  ;;  %v54_v29 = vld [vmem:[%s851_s1 + $0x98] sm:$0xff]  ;;  %v53_v31 = vld [vmem:[%s851_s1 + $0x90] sm:$0xff]  ;;  %p561_p1 = scmp.lt.s32.totalorder %s420_s19, %s420_s19 }
  0x12   :  { %450 = vmatprep.subr.mxu0 %v58_v21  ;;  %502 = vmatprep.subr.mxu1 %v578_v4  ;;  %v39_v28 = vld [vmem:[%s851_s1 + $0x20] sm:$0xff]  ;;  %v38_v30 = vld [vmem:[%s851_s1 + $0x18] sm:$0xff]  ;;  %v37_v32 = vld [vmem:[%s851_s1 + $0x10] sm:$0xff] }
  0x13   :  { %451 = vmatpush3.msra.mxu0 %v42_v22  ;;  %v52_v33 = vld [vmem:[%s851_s1 + $0x88] sm:$0xff]  ;;  %v51_v35 = vld [vmem:[%s851_s1 + $0x80] sm:$0xff]  ;;  %v148_v39 = vld [vmem:[%s853_s3 + $0x18] sm:$0xff]  ;;  %512 = vmatprep.mubr.msk.f32.mxu1 %vm579_vm0, %v578_v4 }
  0x14   :  { %452 = vmatprep.subr.mxu0 %v57_v23  ;;  %v36_v34 = vld [vmem:[%s851_s1 + $0x8] sm:$0xff]  ;;  %v35_v36 = vld [vmem:[%s851_s1] sm:$0xff]  ;;  %v147_v40 = vld [vmem:[%s853_s3 + $0x10] sm:$0xff] }
  0x15   :  { %453 = vmatpush3.msra.mxu0 %v41_v24  ;;  %v33_v37 = vld [vmem:[%s850_s0] sm:$0xff]  ;;  %v146_v41 = vld [vmem:[%s853_s3 + $0x8] sm:$0xff]  ;;  %v242_v49 = vld [vmem:[%s855_s5 + $0x38] sm:$0xff] }
  0x16   :  { %454 = vmatprep.subr.mxu0 %v56_v25  ;;  %v149_v38 = vld [vmem:[%s853_s3 + $0x20] sm:$0xff]  ;;  %v241_v50 = vld [vmem:[%s855_s5 + $0x30] sm:$0xff]  ;;  %v240_v51 = vld [vmem:[%s855_s5 + $0x28] sm:$0xff] }
  0x17   :  { %455 = vmatpush3.msra.mxu0 %v40_v26  ;;  %503 = vmatpush3.msra.mxu1 %v149_v38  ;;  %v145_v42 = vld [vmem:[%s853_s3] sm:$0xff]  ;;  %v238_v53 = vld [vmem:[%s855_s5 + $0x18] sm:$0xff]  ;;  %v237_v54 = vld [vmem:[%s855_s5 + $0x10] sm:$0xff] }
  0x18   :  { %456 = vmatprep.subr.mxu0 %v55_v27  ;;  %504 = vmatprep.subr.mxu1 %v578_v4  ;;  %v427_v44 = vld [vmem:[%s852_s2] ss:$0 sm:$0xff]  ;;  %v236_v55 = vld [vmem:[%s855_s5 + $0x8] sm:$0xff]  ;;  %v331_v57 = vld [vmem:[%s857_s7 + $0x38] sm:$0xff] }
  0x19   :  { %457 = vmatpush3.msra.mxu0 %v39_v28  ;;  %505 = vmatpush3.msra.mxu1 %v148_v39  ;;  %v239_v52 = vld [vmem:[%s855_s5 + $0x20] sm:$0xff]  ;;  %v330_v58 = vld [vmem:[%s857_s7 + $0x30] sm:$0xff]  ;;  %v329_v59 = vld [vmem:[%s857_s7 + $0x28] sm:$0xff] }
  0x1a   :  { %458 = vmatprep.subr.mxu0 %v54_v29  ;;  %506 = vmatprep.subr.mxu1 %v578_v4  ;;  %v235_v56 = vld [vmem:[%s855_s5] sm:$0xff]  ;;  %v327_v61 = vld [vmem:[%s857_s7 + $0x18] sm:$0xff]  ;;  %v326_v3 = vld [vmem:[%s857_s7 + $0x10] sm:$0xff] }
  0x1b   :  { %459 = vmatpush3.msra.mxu0 %v38_v30  ;;  %507 = vmatpush3.msra.mxu1 %v147_v40  ;;  %v328_v60 = vld [vmem:[%s857_s7 + $0x20] sm:$0xff]  ;;  %v325_v5 = vld [vmem:[%s857_s7 + $0x8] sm:$0xff] }
  0x1c   :  { %460 = vmatprep.subr.mxu0 %v53_v31  ;;  %508 = vmatprep.subr.mxu1 %v578_v4  ;;  %v428_v62 = vld [vmem:[%s854_s4] ss:$0 sm:$0xff] }
  0x1d   :  { %461 = vmatpush3.msra.mxu0 %v37_v32  ;;  %509 = vmatpush3.msra.mxu1 %v146_v41  ;;  %v324_v6 = vld [vmem:[%s857_s7] sm:$0xff]  ;;  %s556_s7 = scalar_lea.vmem %s420_s19, 128 }
  0x1e   :  { %462 = vmatprep.subr.mxu0 %v52_v33  ;;  %510 = vmatprep.subr.mxu1 %v578_v4  ;;  %v430_v7 = vld [vmem:[%s856_s6] ss:$0 sm:$0xff]  ;;  %p557_p0 = scmp.ne.s32.totalorder %s420_s19, %s556_s7  ;;  %p562_p2 = scmp.lt.s32.totalorder %s556_s7, %s556_s7 }
  0x1f   :  { %463 = vmatpush3.msra.mxu0 %v36_v34  ;;  %511 = vmatpush3.msra.mxu1 %v145_v42  ;;  %v432_v12 = vld [vmem:[%s858_s8] ss:$0 sm:$0xff] }
  0x20   :  { %464 = vmatprep.subr.mxu0 %v51_v35  ;;  %515 = vmatprep.subr.mxu1 %v578_v4  ;;  %p563_p3 = por %p562_p2, %p561_p1 }
  0x21   :  { %465 = vmatpush3.msra.mxu0 %v35_v36 }
  0x22   :  { %139 = vmatmul.mubr.f32.vlgmr.msra.gmra.mxu0 %v33_v37  ;;  %534 = vmatprep.subr.mxu0 %v578_v4  ;;  %p564_p4 = pnand %p563_p3, %p557_p0 }
  0x23   :  { %550 = vmatprep.mubr.msk.f32.mxu0 %vm579_vm0, %v578_v4  ;;  %535 = vmatpush3.msra.mxu0 %v331_v57 }
  0x24   :  { %536 = vmatprep.subr.mxu0 %v578_v4 }
  0x25   :  { %537 = vmatpush3.msra.mxu0 %v330_v58 }
  0x26   :  { %538 = vmatprep.subr.mxu0 %v578_v4 }
  0x27   :  { %539 = vmatpush3.msra.mxu0 %v329_v59 }
  0x28   :  { %540 = vmatprep.subr.mxu0 %v578_v4 }
  0x29   :  { %541 = vmatpush3.msra.mxu0 %v328_v60 }
  0x2a   :  { %542 = vmatprep.subr.mxu0 %v578_v4 }
  0x2b   :  { %543 = vmatpush3.msra.mxu0 %v327_v61 }
  0x2c   :  { %544 = vmatprep.subr.mxu0 %v578_v4 }
  0x2d   :  { %545 = vmatpush3.msra.mxu0 %v326_v3 }
  0x2e   :  { %546 = vmatprep.subr.mxu0 %v578_v4 }
  0x2f   :  { %547 = vmatpush3.msra.mxu0 %v325_v5 }
  0x30   :  { %548 = vmatprep.subr.mxu0 %v578_v4 }
  0x31   :  { %549 = vmatpush3.msra.mxu0 %v324_v6 }
  0xe2   :  { %v466_v43 = vpop.f32.mrf.mxu0 }
  0xe4   :  { %v467_v45 = vpop.f32.mrf.mxu0 }
  0xe5   :  { %v468_v46 = vadd.f32 %v467_v45, %v466_v43 }
  0xe7   :  { %v141_v47 = vadd.f32 %v468_v46, %v427_v44 }
  0xe9   :  { %v144_v48 = vmax.f32 %v141_v47, 0.0 }
  0xeb   :  { %513 = vmatmul.mubr.msk.f32.vlgmr.msra.gmra.mxu1 %vm160_vm1, %v144_v48 }
  0xec   :  { %516 = vmatpush3.msra.mxu1 %v242_v49  ;;  %531 = vmatprep.mubr.msk.f32.mxu1 %vm579_vm0, %v578_v4 }
  0xed   :  { %517 = vmatprep.subr.mxu1 %v578_v4 }
  0xee   :  { %518 = vmatpush3.msra.mxu1 %v241_v50 }
  0xef   :  { %519 = vmatprep.subr.mxu1 %v578_v4 }
  0xf0   :  { %520 = vmatpush3.msra.mxu1 %v240_v51 }
  0xf1   :  { %521 = vmatprep.subr.mxu1 %v578_v4 }
  0xf2   :  { %522 = vmatpush3.msra.mxu1 %v239_v52 }
  0xf3   :  { %523 = vmatprep.subr.mxu1 %v578_v4 }
  0xf4   :  { %524 = vmatpush3.msra.mxu1 %v238_v53 }
  0xf5   :  { %525 = vmatprep.subr.mxu1 %v578_v4 }
  0xf6   :  { %526 = vmatpush3.msra.mxu1 %v237_v54 }
  0xf7   :  { %527 = vmatprep.subr.mxu1 %v578_v4 }
  0xf8   :  { %528 = vmatpush3.msra.mxu1 %v236_v55 }
  0xf9   :  { %529 = vmatprep.subr.mxu1 %v578_v4 }
  0xfa   :  { %530 = vmatpush3.msra.mxu1 %v235_v56 }
 0x1ab   :  { %v230_v63 = vpop.f32.mrf.mxu1 }
 0x1ac   :  { %v231_v0 = vadd.f32 %v428_v62, %v230_v63 }
 0x1ad   :  { %v514_v1 = vpop.f32.mrf.mxu1 }
 0x1ae   :  { %v234_v2 = vmax.f32 %v231_v0, 0.0 }
 0x1b0   :  { %532 = vmatmul.mubr.msk.f32.vlgmr.msra.gmra.mxu1 %vm160_vm1, %v234_v2 }
 0x270   :  { %v319_v8 = vpop.f32.mrf.mxu1 }
 0x271   :  { %v320_v9 = vadd.f32 %v430_v7, %v319_v8 }
 0x272   :  { %v533_v10 = vpop.f32.mrf.mxu1 }
 0x273   :  { %v323_v11 = vmax.f32 %v320_v9, 0.0 }
 0x275   :  { %551 = vmatmul.mubr.msk.f32.vlgmr.msra.gmra.mxu0 %vm160_vm1, %v323_v11 }
 0x335   :  { %v408_v4 = vpop.f32.mrf.mxu0 }
 0x336   :  { %v409_v13 = vadd.f32 %v432_v12, %v408_v4 }
 0x337   :  { %v552_v14 = vpop.f32.mrf.mxu0 }
 0x338   :  { %412 = vst [vmem:[#allocation2] sm:$0xff] %v409_v13 }
 0x339   :  { %567 = shalt.err (!%p564_p4)
}
 0x33a   :  { %422 = dma.vmem_to_hbm [thread:$0]  %s420_s19, 128, %s859_s9, [#allocation3]  }
 0x33b   :  { %576 = dma.done.wait [#allocation3], 128  }
 0x33c   :  { %577 = vsyncadd [#allocation3], 4294967168 }
 0x33d   :  { %426 = vsyncpa [#allocation3], 1 }

</bundles_post_ra>
